<compile_context>
chip_gen: v6e
topology: v6e:2x2x1
jax: 0.10.0
libtpu: 0.0.40
codegen_flags: <defaults>
</compile_context>

<pallas_src>
import jax
import jax.numpy as jnp
from jax.experimental import pallas as pl
from jax.experimental.pallas import tpu as pltpu


def _tile(extent, target, align):
    """Largest block size <= ~target that is a multiple of `align` and divides
    `extent`; falls back to the full extent (always a legal BlockSpec block)."""
    if extent <= target:
        return extent
    t = max(align, (target // align) * align)
    while t >= align:
        if extent % t == 0:
            return t
        t -= align
    return extent  # no aligned divisor found -> take the full (legal) extent


# ----------------------------- kernel bodies ------------------------------
# Leading size-1 block dims are squeezed (block size None), so every kernel
# sees a fixed small rank: 2D (ts, tl) or 3D (t0, ts, tl).

def _copy_kernel(x_ref, o_ref):
    # pure DMA reshuffle; the axis swap lives entirely in the output index_map
    o_ref[...] = x_ref[...]


def _minor_transpose_kernel(x_ref, o_ref):
    # (ts, tl) -> (tl, ts): single XLU transpose, lane-dense on both sides
    o_ref[...] = jnp.swapaxes(x_ref[...], -2, -1)


def _lead_sublane_kernel(x_ref, o_ref):
    # (t0, ts, tl) -> (ts, t0, tl): sublane shuffle, lane layout untouched
    o_ref[...] = jnp.swapaxes(x_ref[...], 0, 1)


def _lead_lane_kernel(x_ref, o_ref, s1_ref, s2_ref):
    # (t0, ts, tl) -> (tl, ts, t0), staged through VMEM scratch so each step is
    # an individually supported transpose (never a fused major<->lane perm).
    s1_ref[...] = jnp.swapaxes(x_ref[...], 0, 1)    # (ts, t0, tl)
    s2_ref[...] = jnp.swapaxes(s1_ref[...], 1, 2)   # (ts, tl, t0)
    o_ref[...] = jnp.swapaxes(s2_ref[...], 0, 1)    # (tl, ts, t0)


# ------------------------------- wrapper ----------------------------------

def transpose_pallas(x, dim0, dim1):
    """torch.transpose(x, dim0, dim1).contiguous() as a Pallas TPU kernel."""
    ndim = x.ndim
    d0, d1 = sorted((dim0 % ndim, dim1 % ndim))
    if d0 == d1:
        return x

    shape = x.shape
    perm = list(range(ndim))
    perm[d0], perm[d1] = perm[d1], perm[d0]
    perm = tuple(perm)
    out_shape = tuple(shape[p] for p in perm)

    sub, lane = ndim - 2, ndim - 1
    itemsize = jnp.dtype(x.dtype).itemsize
    # sublane packing granule: 8 for f32, 16 for bf16, 32 for int8
    sub_align = max(8, 32 // itemsize)

    in_block = [None] * ndim          # None -> size-1, squeezed in the kernel
    scratch = ()

    if d1 < sub:
        # --- Case A: both swapped axes are leading ------------------------
        # Pure copy; swap expressed purely via the output index_map.
        # ~1 MiB tiles regardless of dtype (wider lane tile for narrow dtypes).
        in_block[sub] = _tile(shape[sub], 512, sub_align)
        in_block[lane] = _tile(shape[lane], max(512, 2048 // itemsize), 128)
        kernel = _copy_kernel
    elif d1 == sub:
        # --- Case B: leading <-> sublane swap ------------------------------
        t0 = _tile(shape[d0], 2 * sub_align, sub_align)
        ts = _tile(shape[sub], 8 * sub_align, sub_align)
        # ~2 MiB per block (8 MiB double-buffered in+out).
        tl_target = max(128, ((2 << 20) // max(t0 * ts * itemsize, 1))
                        // 128 * 128)
        tl = _tile(shape[lane], tl_target, 128)
        in_block[d0], in_block[sub], in_block[lane] = t0, ts, tl
        kernel = _lead_sublane_kernel
    elif d0 == sub:
        # --- Case C: sublane <-> lane (last two axes) ----------------------
        # 128-aligned tiles on both minor axes so the OUTPUT block is
        # lane-dense (no masked vst.msk partial stores).
        in_block[sub] = _tile(shape[sub], 512, 128)
        in_block[lane] = _tile(shape[lane], max(512, 2048 // itemsize), 128)
        kernel = _minor_transpose_kernel
    else:
        # --- Case D: leading <-> lane swap ----------------------------------
        t0 = _tile(shape[d0], 256, 128)   # becomes the output lane extent
        tl = _tile(shape[lane], 128, 128)
        # ~1 MiB per block; scratch adds 2x, double-buffered in/out adds 4x.
        ts_target = max(sub_align,
                        ((1 << 20) // max(t0 * tl * itemsize, 1))
                        // sub_align * sub_align)
        ts = _tile(shape[sub], ts_target, sub_align)
        in_block[d0], in_block[sub], in_block[lane] = t0, ts, tl
        kernel = _lead_lane_kernel
        scratch = (pltpu.VMEM((ts, t0, tl), x.dtype),
                   pltpu.VMEM((ts, tl, t0), x.dtype))

    in_block = tuple(in_block)
    out_block = tuple(in_block[p] for p in perm)
    grid = tuple(s // (b if b is not None else 1)
                 for s, b in zip(shape, in_block))

    out_index = lambda *idx: tuple(idx[p] for p in perm)
    in_index = lambda *idx: idx

    return pl.pallas_call(
        kernel,
        out_shape=jax.ShapeDtypeStruct(out_shape, x.dtype),
        grid=grid,
        in_specs=[pl.BlockSpec(in_block, in_index)],
        out_specs=pl.BlockSpec(out_block, out_index),
        scratch_shapes=scratch,
        compiler_params=pltpu.CompilerParams(
            dimension_semantics=("parallel",) * ndim),
        cost_estimate=pl.CostEstimate(
            flops=0, transcendentals=0,
            bytes_accessed=2 * x.size * itemsize),
    )(x)


class Transpose:
    """Mirror of the aka Transpose(nn.Module): stores dims, applies transpose."""

    def __init__(self, *args, **kwargs):
        self.args = args
        self.kwargs = kwargs

    def __call__(self, x):
        return transpose_pallas(x, *self.args, **self.kwargs)


if __name__ == "__main__":
    key = jax.random.PRNGKey(0)
    # NCHW-ish input: batch=2, channels=4, H=16, W=128 (lane-aligned).
    x = jax.random.normal(key, (2, 4, 16, 128), dtype=jnp.float32)

    ok = True
    # Exercise all structural cases: minor swap, leading<->sublane (adjacent
    # and distant), leading<->leading, leading<->lane, negative dims.
    for dims in [(2, 3), (-1, -2), (1, 2), (0, 2), (0, 1), (1, 3)]:
        y = jax.block_until_ready(Transpose(*dims)(x))
        ref = jnp.swapaxes(x, *dims)
        ok &= (y.shape == ref.shape) and bool(jnp.array_equal(y, ref))

    # Packed-dtype coverage: bf16 uses a 16-row sublane granule.
    xb = x.astype(jnp.bfloat16)
    for dims in [(0, 1), (2, 3)]:
        y = jax.block_until_ready(Transpose(*dims)(xb))
        ref = jnp.swapaxes(xb, *dims)
        ok &= (y.shape == ref.shape) and bool(jnp.array_equal(y, ref))

    # 3-D coverage (sequence-style tensor): leading<->lane and leading<->sublane.
    x3 = jax.random.normal(key, (8, 16, 128), dtype=jnp.float32)
    for dims in [(0, 2), (0, 1)]:
        y = jax.block_until_ready(Transpose(*dims)(x3))
        ref = jnp.swapaxes(x3, *dims)
        ok &= (y.shape == ref.shape) and bool(jnp.array_equal(y, ref))

    print("KERNEL_OK" if ok else "KERNEL_MISMATCH")
</pallas_src>

<mosaic_0001>
module attributes {stable_mosaic.version = 11 : i64} {
  func.func @_minor_transpose_kernel(%arg0: i32, %arg1: i32, %arg2: i32, %arg3: i32, %arg4: memref<1x1x16x128xf32, #tpu.memory_space<vmem>>, %arg5: memref<1x1x128x16xf32, #tpu.memory_space<vmem>>) attributes {dimension_semantics = [#tpu.dimension_semantics<parallel>, #tpu.dimension_semantics<parallel>, #tpu.dimension_semantics<parallel>, #tpu.dimension_semantics<parallel>], iteration_bounds = array<i64: 2, 4, 1, 1>, scalar_prefetch = 0 : i64, scratch_operands = 0 : i64, tpu.core_type = #tpu.core_type<tc>, window_params = [{transform_indices = @transform_0, window_bounds = array<i64: 1, 1, 16, 128>}, {transform_indices = @transform_1, window_bounds = array<i64: 1, 1, 128, 16>}]} {
    %c0 = arith.constant 0 : index
    %c0_0 = arith.constant 0 : index
    %c0_1 = arith.constant 0 : index
    %c0_2 = arith.constant 0 : index
    %0 = vector.load %arg4[%c0, %c0_0, %c0_1, %c0_2] : memref<1x1x16x128xf32, #tpu.memory_space<vmem>>, vector<1x1x16x128xf32>
    %1 = vector.shape_cast %0 : vector<1x1x16x128xf32> to vector<16x128xf32>
    %2 = tpu.transpose %1, [1, 0] : vector<16x128xf32> -> vector<128x16xf32>
    %c0_3 = arith.constant 0 : index
    %c0_4 = arith.constant 0 : index
    %c0_5 = arith.constant 0 : index
    %c0_6 = arith.constant 0 : index
    %3 = vector.load %arg5[%c0_3, %c0_4, %c0_5, %c0_6] : memref<1x1x128x16xf32, #tpu.memory_space<vmem>>, vector<1x1x128x16xf32>
    %4 = vector.shape_cast %3 : vector<1x1x128x16xf32> to vector<128x16xf32>
    %5 = vector.shape_cast %2 : vector<128x16xf32> to vector<1x1x128x16xf32>
    tpu.vector_store %arg5[%c0_3, %c0_4, %c0_5, %c0_6], %5 {strides = array<i32>} : memref<1x1x128x16xf32, #tpu.memory_space<vmem>>, vector<1x1x128x16xf32>,
    return
  }
  func.func @transform_0(%arg0: i32, %arg1: i32, %arg2: i32, %arg3: i32) -> (i32, i32, i32, i32) {
    %c0_i32 = arith.constant 0 : i32
    return %arg0, %arg1, %arg2, %arg3 : i32, i32, i32, i32
  }
  func.func @transform_1(%arg0: i32, %arg1: i32, %arg2: i32, %arg3: i32) -> (i32, i32, i32, i32) {
    %c0_i32 = arith.constant 0 : i32
    return %arg0, %arg1, %arg3, %arg2 : i32, i32, i32, i32
  }
}

</mosaic_0001>

<bundles_post_ra>
// kernel: tpu_custom_call.1
= control target key start
LH: loop header
LB: loop body
LE: loop exit
PB: predicated region body
PF: predicated region fallthrough
CT: control target
= control target key end

     0   :  { %6 = vsyncpa [#allocation3], 0  ;;  %s745_s0 = inlined_call_operand.hbm [shape: f32[2,4,16,128], index: 0, kind: input, shape index: {}]   ;;  %s746_s1 = inlined_call_operand.vmem [shape: f32[2,4,128,16], index: 1, kind: output, shape index: {}]  }
   0x1   :  { %8 = vsyncpa [#allocation3 + $0x1], 0  ;;  %s586_s6 = smov 0   ;;  %s588_s7 = smov 0  }
   0x2   :  { %s590_s8 = smov 0   ;;  %s592_s9 = smov 0  }
   0x3   :  { %s594_s10 = smov 0   ;;  %s596_s11 = smov 0  }
   0x4   :  { %s598_s12 = smov 0   ;;  %s600_s13 = smov 0  }
   0x5 LB: > { %s388_s14 = sadd.s32 4294967295, %s571_s13   ;;  %s36_s15 = sadd.s32 1, %s563_s11  ;;  %s571_s13 = sphi %s600_s13, %s14_s13   ;;  %s567_s12 = sphi %s598_s12, %s756_s12   ;;  %s563_s11 = sphi %s596_s11, %s755_s11   ;;  %s559_s10 = sphi %s594_s10, %s754_s10   ;;  %s555_s9 = sphi %s592_s9, %s753_s9   ;;  %s551_s8 = sphi %s590_s8, %s752_s8   ;;  %s547_s7 = sphi %s588_s7, %s751_s7   ;;  %s543_s6 = sphi %s586_s6, %s750_s6  }
   0x6   : > { %p38_p0 = scmp.ge.s32.totalorder %s36_s15, 4  ;;  %s40_s16 = sadd.s32 1, %s567_s12 }
   0x7   : > { %s53_s17 = sadd.s32 1, %s551_s8  ;;  %p60_p1 = scmp.ne.s32.totalorder %s551_s8, %s547_s7 }
   0x8   : > { %s758_s15 = smov (%p38_p0, %s36_s15), 0  ;;  %s760_s16 = smov (!%p38_p0, %s40_s16), %s567_s12 }
   0x9   : > { %s45_s18 = ssub.s32 %s563_s11, %s758_s15  ;;  %p61_p2 = scmp.eq.s32.totalorder %s571_s13, 0 }
   0xa   : > { %p42_p3 = scmp.ge.s32.totalorder %s760_s16, 2  ;;  %p66_p4 = scmp.ne.s32.totalorder %s547_s7, %s543_s6 }
   0xb   : > { %p637_p5 = por %p61_p2, %p60_p1  ;;  %p67_p6 = scmp.eq.s32.totalorder %s388_s14, 0 }
   0xc   : > { %s762_s16 = smov (%p42_p3, %s760_s16), 0  ;;  %p409_p8 = scmp.lt.s32.totalorder %s571_s13, 8 }
   0xd   : > { %p643_p7 = por %p67_p6, %p66_p4  ;;  %s44_s21 = ssub.s32 %s567_s12, %s762_s16 }
   0xe   : > { %s46_s22 = sor.u32 %s45_s18, %s44_s21  ;;  %s122_s23 = sand.u32 1, %s551_s8  }
   0xf   : > { %p51_p9 = scmp.eq.s32.totalorder %s46_s22, 0  ;;  %s392_s24 = sshll.u32 %s122_s23, 4 }
  0x10   : > { %s393_s25 = sshll.u32 %s563_s11, 1  ;;  %s394_s27 = sshll.u32 %s567_s12, 3 }
  0x11   : > { %s653_s26 = scalar_select %p51_p9, %s551_s8, %s53_s17  }
  0x12   : > { %s135_s28 = sadd.s32 %s394_s27, %s393_s25  ;;  %s126_s29 = scalar_lea.vmem [#allocation2], %s392_s24 }
  0x13   : > { %s138_s30 = sshll.u32 %s126_s29, 4  ;;  %s395_s2 = sshll.u32 %s135_s28, 7  ;;  %s139_s30 = int_to_ptr.vmem [resolvable:$true] %s138_s30 }
  0x14   : > { %s137_s5 = scalar_lea.hbm %s745_s0, %s395_s2  ;;  %p663_p10 = pnand %p409_p8, %p637_p5 }
  0x15   : > { %p396_p11 = scmp.ge.s32.totalorder %s571_s13, 1  ;;  %s123_s14 = scalar_lea.sflag [#allocation3], %s122_s23 }
  0x16   : > { %p479_p12 = pneg %p663_p10  ;;  %s490_s17 = scalar_lea.vmem %s139_s30, 256 }
  0x17   : > { %p491_p13 = scmp.ne.s32.totalorder %s139_s30, %s490_s17  ;;  %s573_s18 = smov [#allocation2]  }
  0x18   : > { %s495_s21 = sshll.u32 %s573_s18, 4  ;;  %s496_s21 = int_to_ptr.vmem [resolvable:$false] %s495_s21 }
  0x19   : > { %p493_p0 = pnand %p491_p13, %p479_p12  ;;  %s497_s22 = scalar_lea.vmem %s496_s21, 512 }
  0x1a   : > { %p498_p2 = scmp.lt.s32.totalorder %s139_s30, %s496_s21  ;;  %p499_p3 = scmp.lt.s32.totalorder %s497_s22, %s490_s17 }
  0x1b   : > { %p494_p1 = pneg %p493_p0 }
  0x1c   : > { %p500_p4 = por %p499_p3, %p498_p2 }
  0x1e   : > { %p501_p5 = pnand %p500_p4, %p494_p1 }
  0x20   : > { %504 = shalt.err (!%p501_p5)
}
  0x21   : > { %s574_s19 = smov 128   ;;  %s575_s23 = smov 8  }
  0x22   : > { %408 = dma.hbm_to_vmem [thread:$0]  (!%p663_p10), %s137_s5, 256, %s139_s30, %s123_s14, %s574_s19, %s574_s19, %s575_s23  }
  0x23   : > { %p146_p6 = scmp.lt.s32.totalorder %s571_s13, 9 }
  0x25   : > { %p147_p8 = pnand %p396_p11, %p146_p6 }
  0x26   : > { %s152_s24 = sand.u32 (!%p147_p8), 1, %s547_s7  }
  0x27   : > { %150 = sbr.rel (%p147_p8) target bundleno = 232 (0xe8), region = 24  ;;  %s397_s25 = sshll.u32 (!%p147_p8), %s152_s24, 4 }
  0x28   : > { %s153_s27 = scalar_lea.sflag (!%p147_p8), [#allocation3], %s152_s24  ;;  %s156_s28 = scalar_lea.vmem (!%p147_p8), [#allocation2], %s397_s25 }
  0x2c   : > { %538 = dma.done.wait (%p643_p7), %s153_s27, 256  }
  0x2d   : > { %540 = vsyncadd (%p643_p7), %s153_s27, 4294967040  ;;  %v204_v0 = vld [vmem:[%s156_s28] sm:$0xff]  ;;  %v205_v1 = vld [vmem:[%s156_s28 + $0x8] sm:$0xff]  ;;  %p188_p9 = scmp.lt.s32.totalorder %s559_s10, 1  ;;  %p190_p10 = scmp.lt.s32.totalorder %s555_s9, 3  ;;  %vm238_vm0 = vcmask 130048  }
  0x2e   : > { %206 = vxpose.xlu0.b32.start [1/2] (short) %v204_v0, 128 }
  0x2f   : > { %s764_s10 = smov (!%p188_p9, %s559_s10), 1  ;;  %s766_s9 = smov (!%p190_p10, %s555_s9), 3 }
  0x30   : > { %s398_s29 = sshll.u32 %s766_s9, 4  ;;  %s399_s30 = sshll.u32 %s764_s10, 6 }
  0x31   : > { %s200_s2 = sadd.s32 %s399_s30, %s398_s29 }
  0x32   : > { %207 = vxpose.xlu0.b32.end [2/2] (short) %v205_v1, 128  ;;  %s400_s3 = sshll.u32 %s200_s2, 3 }
  0x33   : > { %s687_s20 = scalar_lea.vmem %s746_s1, %s400_s3 }
  0xaa   : > { %v222_v2 = vpop.trf.xlu0 }
  0xab   : > { %239 = vst.msk [vmem:[%s687_s20] sm:$0xff] %vm238_vm0, %v222_v2 }
  0xae   : > { %v223_v3 = vpop.trf.xlu0 }
  0xaf   : > { %240 = vst.msk [vmem:[%s687_s20 + $0x8] sm:$0xff] %vm238_vm0, %v223_v3 }
  0xb2   : > { %v224_v4 = vpop.trf.xlu0 }
  0xb3   : > { %241 = vst.msk [vmem:[%s687_s20 + $0x10] sm:$0xff] %vm238_vm0, %v224_v4 }
  0xb6   : > { %v225_v5 = vpop.trf.xlu0 }
  0xb7   : > { %242 = vst.msk [vmem:[%s687_s20 + $0x18] sm:$0xff] %vm238_vm0, %v225_v5 }
  0xba   : > { %v226_v6 = vpop.trf.xlu0 }
  0xbb   : > { %243 = vst.msk [vmem:[%s687_s20 + $0x20] sm:$0xff] %vm238_vm0, %v226_v6 }
  0xbe   : > { %v227_v7 = vpop.trf.xlu0 }
  0xbf   : > { %244 = vst.msk [vmem:[%s687_s20 + $0x28] sm:$0xff] %vm238_vm0, %v227_v7 }
  0xc2   : > { %v228_v8 = vpop.trf.xlu0 }
  0xc3   : > { %245 = vst.msk [vmem:[%s687_s20 + $0x30] sm:$0xff] %vm238_vm0, %v228_v8 }
  0xc6   : > { %v229_v9 = vpop.trf.xlu0 }
  0xc7   : > { %246 = vst.msk [vmem:[%s687_s20 + $0x38] sm:$0xff] %vm238_vm0, %v229_v9 }
  0xca   : > { %v230_v10 = vpop.trf.xlu0 }
  0xcb   : > { %247 = vst.msk [vmem:[%s687_s20 + $0x40] sm:$0xff] %vm238_vm0, %v230_v10 }
  0xce   : > { %v231_v11 = vpop.trf.xlu0 }
  0xcf   : > { %248 = vst.msk [vmem:[%s687_s20 + $0x48] sm:$0xff] %vm238_vm0, %v231_v11 }
  0xd2   : > { %v232_v12 = vpop.trf.xlu0 }
  0xd3   : > { %249 = vst.msk [vmem:[%s687_s20 + $0x50] sm:$0xff] %vm238_vm0, %v232_v12 }
  0xd6   : > { %v233_v13 = vpop.trf.xlu0 }
  0xd7   : > { %250 = vst.msk [vmem:[%s687_s20 + $0x58] sm:$0xff] %vm238_vm0, %v233_v13 }
  0xda   : > { %v234_v14 = vpop.trf.xlu0 }
  0xdb   : > { %251 = vst.msk [vmem:[%s687_s20 + $0x60] sm:$0xff] %vm238_vm0, %v234_v14 }
  0xde   : > { %v235_v15 = vpop.trf.xlu0 }
  0xdf   : > { %252 = vst.msk [vmem:[%s687_s20 + $0x68] sm:$0xff] %vm238_vm0, %v235_v15 }
  0xe2   : > { %v236_v16 = vpop.trf.xlu0 }
  0xe3   : > { %253 = vst.msk [vmem:[%s687_s20 + $0x70] sm:$0xff] %vm238_vm0, %v236_v16 }
  0xe6   : > { %v237_v17 = vpop.trf.xlu0 }
  0xe7   : > { %254 = vst.msk [vmem:[%s687_s20 + $0x78] sm:$0xff] %vm238_vm0, %v237_v17 }
  0xe8 PF: > { %s14_s13 = sadd.s32 1, %s571_s13   ;;  %s750_s6 = smov %s547_s7 }
  0xe9   : > { %p11_p7 = scmp.ge.s32.totalorder %s14_s13, 10   ;;  %s751_s7 = smov %s551_s8 }
  0xea   : > { %s752_s8 = smov %s653_s26  ;;  %s753_s9 = smov %s563_s11 }
  0xeb   : > { %s754_s10 = smov %s567_s12  ;;  %s755_s11 = smov %s758_s15 }
  0xec   : > { %s756_s12 = smov %s762_s16  ;;  %13 = sbr.rel (!%p11_p7) target bundleno = 5 (0x5), region = 64 }
  0xf1   :  { %299 = vsyncpa [#allocation3], 1 }
  0xf2   :  { %301 = vsyncpa [#allocation3 + $0x1], 1 }

</bundles_post_ra>
